<compile_context>
chip_gen: v7x
topology: tpu7x:2x2x1
jax: 0.10.0
libtpu: 0.0.40
codegen_flags: <defaults>
</compile_context>

<pallas_src>
import jax
import jax.numpy as jnp
from jax.experimental import pallas as pl
from jax.experimental.pallas import tpu as pltpu


def _mlp_kernel(x_ref, w1_ref, b1_ref, w2_ref, b2_ref, o_ref):
    """x:(tb,D_in)  w1:(D_in,H)  b1:(1,H)  w2:(H,D_out)  b2:(1,D_out)."""
    h = jnp.dot(x_ref[...], w1_ref[...], preferred_element_type=jnp.float32)
    h = jnp.maximum(h + b1_ref[...].astype(jnp.float32), 0.0)
    y = jnp.dot(h.astype(w2_ref.dtype), w2_ref[...],
                preferred_element_type=jnp.float32)
    y = jnp.maximum(y + b2_ref[...].astype(jnp.float32), 0.0)
    o_ref[...] = y.astype(o_ref.dtype)
    # TODO(synk): if xprof ever shows a store-limited wall-compute gap, emit a
    # lane-dense (tb//16, 128) output slab instead of the 8-wide masked store.


def prepare_params(w1, b1, w2, b2):
    """Call ONCE at parameter-init time (not per forward call).

    Weights are stored (in, out) -- pre-transposed relative to nn.Linear's
    (out, in) -- and biases become 2-D rows so they broadcast over the batch
    inside the kernel without any per-call reshape/concat in the hot path.
    """
    return w1, b1.reshape(1, -1), w2, b2.reshape(1, -1)


def simple_feature_extractor(x, w1, b1_2d, w2, b2_2d, *,
                             block_batch=2048, small_batch=512):
    """x: (B, D_in); w1: (D_in, H); b1_2d: (1, H); w2: (H, D_out); b2_2d: (1, D_out)."""
    assert block_batch % 8 == 0, "batch tile must be a multiple of 8 (sublane)"
    B, D_in = x.shape
    D_out = w2.shape[1]

    if B <= small_batch:
        # Launch-overhead regime: no grid, whole problem in one kernel body,
        # all operands resident in VMEM.
        return pl.pallas_call(
            _mlp_kernel,
            out_shape=jax.ShapeDtypeStruct((B, D_out), x.dtype),
            in_specs=[pl.BlockSpec(memory_space=pltpu.MemorySpace.VMEM)] * 5,
            out_specs=pl.BlockSpec(memory_space=pltpu.MemorySpace.VMEM),
        )(x, w1, b1_2d, w2, b2_2d)

    # Batch-tiled path: tile only the batch axis; parameters stay pinned in
    # VMEM across grid steps.  No padding / slicing of x or the output --
    # Pallas masks the writeback of the ragged final block.
    tb = block_batch
    n_blocks = pl.cdiv(B, tb)
    if n_blocks < 2:
        # Guarantee >= 2 "parallel" blocks so both v7x TensorCores get work.
        tb = max(8, (((B + 1) // 2) + 7) // 8 * 8)
        n_blocks = pl.cdiv(B, tb)

    return pl.pallas_call(
        _mlp_kernel,
        out_shape=jax.ShapeDtypeStruct((B, D_out), x.dtype),
        grid=(n_blocks,),
        in_specs=[
            pl.BlockSpec((tb, D_in), lambda i: (i, 0)),
            # Parameters: full-array blocks pinned at (0, 0) -> resident in
            # VMEM across every grid step (no re-DMA).
            pl.BlockSpec(w1.shape, lambda i: (0, 0)),
            pl.BlockSpec(b1_2d.shape, lambda i: (0, 0)),
            pl.BlockSpec(w2.shape, lambda i: (0, 0)),
            pl.BlockSpec(b2_2d.shape, lambda i: (0, 0)),
        ],
        out_specs=pl.BlockSpec((tb, D_out), lambda i: (i, 0)),
        compiler_params=pltpu.CompilerParams(
            dimension_semantics=("parallel",),      # megacore / dual-TC split
            vmem_limit_bytes=32 * 1024 * 1024,      # v5e default is only 16 MiB
        ),
    )(x, w1, b1_2d, w2, b2_2d)


if __name__ == "__main__":
    # Module config: input_dim=32, hidden_dim=16, output_dim=8.
    batch, input_dim, hidden_dim, output_dim = 8, 32, 16, 8

    key = jax.random.PRNGKey(0)
    kx, kw1, kb1, kw2, kb2, kx2 = jax.random.split(key, 6)

    x = jax.random.normal(kx, (batch, input_dim), dtype=jnp.float32)

    # Deterministic init mimicking nn.Linear's uniform(-1/sqrt(fan_in), +1/sqrt(fan_in)).
    bound1 = 1.0 / jnp.sqrt(input_dim)
    w1 = jax.random.uniform(kw1, (input_dim, hidden_dim), jnp.float32, -bound1, bound1)
    b1 = jax.random.uniform(kb1, (hidden_dim,), jnp.float32, -bound1, bound1)
    bound2 = 1.0 / jnp.sqrt(hidden_dim)
    w2 = jax.random.uniform(kw2, (hidden_dim, output_dim), jnp.float32, -bound2, bound2)
    b2 = jax.random.uniform(kb2, (output_dim,), jnp.float32, -bound2, bound2)

    # One-time parameter prep (hoisted out of the forward path).
    w1p, b1p, w2p, b2p = prepare_params(w1, b1, w2, b2)

    def reference(xx):
        h = jnp.maximum(xx @ w1 + b1, 0.0)
        return jnp.maximum(h @ w2 + b2, 0.0)

    # 1) Tiny batch -> no-grid fast path.
    out = jax.block_until_ready(simple_feature_extractor(x, w1p, b1p, w2p, b2p))
    assert out.shape == (batch, output_dim)
    assert jnp.allclose(out, reference(x), atol=1e-4, rtol=1e-4)

    # 2) Larger batch (not a tile multiple) -> grid path with >= 2 "parallel"
    #    blocks and a ragged, masked-writeback final block (no pad / no slice).
    x_big = jax.random.normal(kx2, (600, input_dim), dtype=jnp.float32)
    out_big = jax.block_until_ready(
        simple_feature_extractor(x_big, w1p, b1p, w2p, b2p))
    assert out_big.shape == (600, output_dim)
    assert jnp.allclose(out_big, reference(x_big), atol=1e-4, rtol=1e-4)

    # 3) bf16 inputs/params (halves HBM traffic); accumulation stays f32 in
    #    the kernel, so compare against the f32 reference loosely.
    out_bf16 = jax.block_until_ready(
        simple_feature_extractor(
            x_big.astype(jnp.bfloat16),
            w1p.astype(jnp.bfloat16), b1p.astype(jnp.bfloat16),
            w2p.astype(jnp.bfloat16), b2p.astype(jnp.bfloat16)))
    assert out_bf16.shape == (600, output_dim)
    assert out_bf16.dtype == jnp.bfloat16
    assert jnp.allclose(out_bf16.astype(jnp.float32), reference(x_big),
                        atol=5e-2, rtol=5e-2)

    print("KERNEL_OK")
</pallas_src>

<mosaic_0001>
module attributes {stable_mosaic.version = 11 : i64} {
  func.func @_mlp_kernel(%arg0: memref<8x32xf32, #tpu.memory_space<vmem>>, %arg1: memref<32x16xf32, #tpu.memory_space<vmem>>, %arg2: memref<1x16xf32, #tpu.memory_space<vmem>>, %arg3: memref<16x8xf32, #tpu.memory_space<vmem>>, %arg4: memref<1x8xf32, #tpu.memory_space<vmem>>, %arg5: memref<8x8xf32, #tpu.memory_space<vmem>>) attributes {dimension_semantics = [], scalar_prefetch = 0 : i64, scratch_operands = 0 : i64, tpu.core_type = #tpu.core_type<tc>} {
    %c0 = arith.constant 0 : index
    %c0_0 = arith.constant 0 : index
    %0 = vector.load %arg0[%c0, %c0_0] : memref<8x32xf32, #tpu.memory_space<vmem>>, vector<8x32xf32>
    %c0_1 = arith.constant 0 : index
    %c0_2 = arith.constant 0 : index
    %1 = vector.load %arg1[%c0_1, %c0_2] : memref<32x16xf32, #tpu.memory_space<vmem>>, vector<32x16xf32>
    %cst = arith.constant dense<0.000000e+00> : vector<8x16xf32>
    %2 = tpu.matmul %0, %1, %cst {dimension_numbers = #tpu.dot_dimension_numbers<[1], [0], [0], [1], [0, 0, 1, 1], [], []>} : vector<8x32xf32>, vector<32x16xf32>, vector<8x16xf32> -> vector<8x16xf32>
    %c0_3 = arith.constant 0 : index
    %c0_4 = arith.constant 0 : index
    %3 = vector.load %arg2[%c0_3, %c0_4] : memref<1x16xf32, #tpu.memory_space<vmem>>, vector<1x16xf32>
    %4 = vector.broadcast %3 : vector<1x16xf32> to vector<8x16xf32>
    %5 = arith.addf %2, %4 : vector<8x16xf32>
    %cst_5 = arith.constant 0.000000e+00 : f32
    %6 = vector.broadcast %cst_5 : f32 to vector<8x16xf32>
    %7 = arith.maximumf %5, %6 : vector<8x16xf32>
    %c0_6 = arith.constant 0 : index
    %c0_7 = arith.constant 0 : index
    %8 = vector.load %arg3[%c0_6, %c0_7] : memref<16x8xf32, #tpu.memory_space<vmem>>, vector<16x8xf32>
    %cst_8 = arith.constant dense<0.000000e+00> : vector<8x8xf32>
    %9 = tpu.matmul %7, %8, %cst_8 {dimension_numbers = #tpu.dot_dimension_numbers<[1], [0], [0], [1], [0, 0, 1, 1], [], []>} : vector<8x16xf32>, vector<16x8xf32>, vector<8x8xf32> -> vector<8x8xf32>
    %c0_9 = arith.constant 0 : index
    %c0_10 = arith.constant 0 : index
    %10 = vector.load %arg4[%c0_9, %c0_10] : memref<1x8xf32, #tpu.memory_space<vmem>>, vector<1x8xf32>
    %11 = vector.broadcast %10 : vector<1x8xf32> to vector<8x8xf32>
    %12 = arith.addf %9, %11 : vector<8x8xf32>
    %cst_11 = arith.constant 0.000000e+00 : f32
    %13 = vector.broadcast %cst_11 : f32 to vector<8x8xf32>
    %14 = arith.maximumf %12, %13 : vector<8x8xf32>
    %c0_12 = arith.constant 0 : index
    %c0_13 = arith.constant 0 : index
    %15 = vector.load %arg5[%c0_12, %c0_13] : memref<8x8xf32, #tpu.memory_space<vmem>>, vector<8x8xf32>
    tpu.vector_store %arg5[%c0_12, %c0_13], %14 {strides = array<i32>} : memref<8x8xf32, #tpu.memory_space<vmem>>, vector<8x8xf32>,
    return
  }
}

</mosaic_0001>

<bundles_post_ra>
// kernel: tpu_custom_call.1
= control target key start
LH: loop header
LB: loop body
LE: loop exit
PB: predicated region body
PF: predicated region fallthrough
CT: control target
= control target key end

     0   :  { %v275_v3 = vmov 0.0|0.0   ;;  %vm276_vm0 = vmmov 0   ;;  %v277_v6 = vmov 0.0   ;;  %s348_s0 = inlined_call_operand.vmem [shape: f32[8,32], index: 0, kind: input, shape index: {}]   ;;  %s349_s1 = inlined_call_operand.vmem [shape: f32[32,16], index: 1, kind: input, shape index: {}]   ;;  %s350_s2 = inlined_call_operand.vmem [shape: f32[1,16], index: 2, kind: input, shape index: {}]   ;;  %s351_s3 = inlined_call_operand.vmem [shape: f32[16,8], index: 3, kind: input, shape index: {}]   ;;  %s352_s4 = inlined_call_operand.vmem [shape: f32[1,8], index: 4, kind: input, shape index: {}]   ;;  %s353_s5 = inlined_call_operand.hbm [shape: f32[8,8], index: 5, kind: output, shape index: {}]  }
   0x1   :  { %v22_v0 = vld [vmem:[%s349_s1] sm:$0xff]  ;;  %v23_v1 = vld [vmem:[%s349_s1 + $0x8] sm:$0xff]  ;;  %v24_v2 = vld [vmem:[%s349_s1 + $0x10] sm:$0xff]  ;;  %238 = vmatprep.subr.bf16.mxu0 %v275_v3  ;;  %228 = vmatprep.mubr.msk.f32.mxu0 %vm276_vm0, %v277_v6 }
   0x2   :  { %v239_v4 = vpack.c.bf16 %v23_v1, %v22_v0  ;;  %v25_v5 = vld [vmem:[%s349_s1 + $0x18] sm:$0xff]  ;;  %244 = vmatprep.subr.bf16.mxu1 %v275_v3  ;;  %235 = vmatprep.mubr.msk.f32.mxu1 %vm276_vm0, %v277_v6 }
   0x3   :  { %10 = vsyncpa [#allocation3], 0  ;;  %v242_v7 = vpack.c.bf16 %v25_v5, %v24_v2  ;;  %v21_v8 = vld [vmem:[%s348_s0] sm:$0xff]  ;;  %vm33_vm1 = vcmask 261120   ;;  %v109_v10 = vld [vmem:[%s351_s3 + $0x8] sm:$0xff]  ;;  %vm117_vm2 = vcmask 130048  }
   0x4   :  { %240 = vmatpush3.bf16.msra.mxu0 %v239_v4  ;;  %v108_v9 = vld [vmem:[%s351_s3] sm:$0xff]  ;;  %s278_s9 = smov [#allocation2]   ;;  %vm192_vm3 = vcmask 64512  }
   0x5   :  { %241 = vmatprep.subr.bf16.mxu0 %v275_v3  ;;  %v245_v11 = vpack.c.bf16 %v109_v10, %v108_v9  ;;  %v208_v12 = vld [vmem:[%s350_s2] ss:$0 sm:$0xff]  ;;  %s200_s10 = sshll.u32 %s278_s9, 4  ;;  %s201_s10 = int_to_ptr.vmem [resolvable:$true] %s200_s10 }
   0x6   :  { %v210_v17 = vld [vmem:[%s352_s4] ss:$0 sm:$0xff]  ;;  %s251_s2 = scalar_lea.vmem %s201_s10, 128  ;;  %p256_p1 = scmp.lt.s32.totalorder %s201_s10, %s201_s10 }
   0x7   :  { %246 = vmatpush3.bf16.msra.mxu1 %v245_v11  ;;  %p252_p0 = scmp.ne.s32.totalorder %s201_s10, %s251_s2  ;;  %p257_p2 = scmp.lt.s32.totalorder %s251_s2, %s251_s2 }
   0x8   :  { %243 = vmatpush3.bf16.msra.mxu0 %v242_v7 }
   0x9   :  { %p258_p3 = por %p257_p2, %p256_p1 }
   0xb   :  { %229 = vmatmul.mubr.msk.f32.vlgmr.msra.gmra.mrb[0].mxu0 %vm33_vm1, %v21_v8  ;;  %p259_p4 = pnand %p258_p3, %p252_p0 }
  0xde   :  { %v103_v13 = vpop.f32.mrb[0].mxu0 }
  0xdf   :  { %v104_v14 = vadd.f32 %v208_v12, %v103_v13  ;;  %v230_v15 = vpop.f32.mrb[1].mxu0 }
  0xe1   :  { %v107_v16 = vmax.f32 %v104_v14, 0.0 }
  0xe3   :  { %236 = vmatmul.mubr.msk.f32.vlgmr.msra.gmra.mrb[0].mxu1 %vm117_vm2, %v107_v16 }
 0x1b6   :  { %v187_v18 = vpop.f32.mrb[0].mxu1 }
 0x1b7   :  { %v188_v19 = vadd.f32 %v210_v17, %v187_v18  ;;  %v237_v20 = vpop.f32.mrb[1].mxu1 }
 0x1b9   :  { %v191_v21 = vmax.f32 %v188_v19, 0.0 }
 0x1bb   :  { %193 = vst.msk [vmem:[#allocation2] sm:$0xff] %vm192_vm3, %v191_v21 }
 0x1bc   :  { %262 = shalt.err (!%p259_p4)
}
 0x1bd   :  { %s263_s4 = scalar_lea.hbm %s353_s5, 128 }
 0x1be   :  { %p264_p5 = scmp.ne.s32.totalorder %s353_s5, %s263_s4  ;;  %p267_p6 = scmp.lt.u32.totalorder %s263_s4, %s353_s5 }
 0x1c0   :  { %p269_p7 = pnand %p267_p6, %p264_p5 }
 0x1c2   :  { %272 = shalt.err (!%p269_p7)
}
 0x1c3   :  { %203 = dma.vmem_to_hbm [thread:$0]  %s201_s10, 128, %s353_s5, [#allocation3]  }
 0x1c4   :  { %273 = dma.done.wait [#allocation3], 128  }
 0x1c5   :  { %274 = vsyncadd [#allocation3], 4294967168 }
 0x1c6   :  { %207 = vsyncpa [#allocation3], 1 }

</bundles_post_ra>
